<compile_context>
chip_gen: v7x
topology: tpu7x:2x2x1
jax: 0.10.0
libtpu: 0.0.40
codegen_flags: <defaults>
</compile_context>

<pallas_src>
import functools

import jax
import jax.numpy as jnp
from jax import lax
from jax.experimental import pallas as pl
from jax.experimental.pallas import tpu as pltpu

_SAMPLES_PER_ROW = 32      # 4 f32 components per sample, 128 lanes per row
_TR_MAX = 2048             # rows per grid step (~1 MiB per input block)


def _round_up(x, m):
    return ((x + m - 1) // m) * m


def _loss_quad(pt, cv, *, eps):
    """Per-lane 2x2 Gaussian NLL on quad-interleaved (rows, 128) tiles.

    pt lanes (per 4-lane quad): [px, py, tx, ty]; cv lanes: [a, b, c, d].
    Returns (loss, keep, lane):
      * loss is valid exactly at the lanes where `keep` is True (one lane per
        sample quad, which lane depends on the rotate direction),
      * lane is the int32 lane-index iota (reused by callers for masking).
    """
    s1 = lambda x: pltpu.roll(x, 1, axis=1)
    s2 = lambda x: pltpu.roll(x, 2, axis=1)
    s3 = lambda x: pltpu.roll(x, 3, axis=1)

    d_ = cv
    c_ = s1(cv)
    b_ = s2(cv)
    a_ = s3(cv)

    diff = pt - s2(pt)            # at kept lane: (t - p) components
    dy = diff
    dx = s1(diff)

    det = a_ * d_ - b_ * c_
    # EUP reciprocal + one Newton step -> ~f32-exact, keeps the divide off the
    # long-latency VALU path.
    inv = pl.reciprocal(det, approx=True)
    inv = inv * (2.0 - det * inv)
    # inv(cov) = [[d, -b], [-c, a]] / det
    quad = (d_ * dx * dx - (b_ + c_) * dx * dy + a_ * dy * dy) * inv
    loss = 0.5 * (jnp.log(det + eps) + quad)

    # Direction-proof valid-lane mask: a lane is valid iff its shift-by-3
    # source lane lies in the same 4-lane quad.  The loss expression above is
    # correct at exactly those lanes for either rotate direction.
    lane = lax.broadcasted_iota(jnp.int32, pt.shape, 1)
    quad_id = lane >> 2
    keep = s3(quad_id) == quad_id
    return loss, keep, lane


def _fold_rows(x):
    """(rows, 128) -> (8, 128): sum 8-row groups, log-depth where possible."""
    n = x.shape[0]
    while n > 8 and n % 16 == 0:
        n //= 2
        x = x[:n] + x[n:]
    if n > 8:
        x = x.reshape(n // 8, 8, 128).sum(axis=0)
    return x


def _mvn_nll_psum_kernel(pt_ref, cov_ref, psum_ref, *, eps, tr, m_total,
                         n_blocks):
    """mean/sum path: emit one dense (8, 128) partial-sum tile per block."""
    loss, keep, lane = _loss_quad(pt_ref[...], cov_ref[...], eps=eps)

    def write(mask):
        psum_ref[...] = _fold_rows(jnp.where(mask, loss, 0.0))[None]

    # Blocks with index < full_blocks contain only valid samples.
    full_blocks = m_total // (tr * _SAMPLES_PER_ROW)
    if full_blocks >= n_blocks:
        write(keep)                               # no padding anywhere
    else:
        i = pl.program_id(0)

        @pl.when(i < full_blocks)
        def _():
            write(keep)                           # fast path: no tail mask

        @pl.when(i >= full_blocks)
        def _():
            # Tail mask, overflow-free: compare (row, sample-in-row) against
            # the Python-int split of M instead of a flat sample index.
            row = lax.broadcasted_iota(jnp.int32, loss.shape, 0)
            grow = row + i * tr
            s_in_row = lane >> 2
            full_rows = m_total // _SAMPLES_PER_ROW
            rem = m_total % _SAMPLES_PER_ROW
            valid = (grow < full_rows) | ((grow == full_rows) &
                                          (s_in_row < rem))
            write(keep & valid)


def _mvn_nll_none_kernel(pt_ref, cov_ref, out_ref, *, eps):
    """'none' path: dense slab, per-sample loss in one lane of its quad."""
    loss, keep, _ = _loss_quad(pt_ref[...], cov_ref[...], eps=eps)
    out_ref[...] = jnp.where(keep, loss, 0.0)


def multivariate_gaussian_nll_loss(pred, cov, target,
                                   reduction="mean", eps=1e-6):
    """JAX/Pallas equivalent of MultivariateGaussianNLLLoss.forward (2-D)."""
    if reduction not in ("mean", "sum", "none"):
        raise ValueError(f"Invalid reduction: {reduction}")
    if pred.shape[-1] != 2 or cov.shape[-2:] != (2, 2):
        raise ValueError("only spatial_dims=2 is supported")

    lead_shape = pred.shape[:-1]
    M = 1
    for s in lead_shape:
        M *= int(s)
    f32 = jnp.float32

    if M == 0:
        if reduction == "none":
            return jnp.zeros(lead_shape, f32)
        return jnp.asarray(jnp.nan if reduction == "mean" else 0.0, f32)

    # ---- layout: ONE cheap fused pass builds [px,py,tx,ty]; cov is free ----
    pt = jnp.concatenate(
        [jnp.asarray(pred, f32).reshape(M, 2),
         jnp.asarray(target, f32).reshape(M, 2)], axis=-1)        # (M, 4)
    cv = jnp.asarray(cov, f32).reshape(M, 4)                      # free reshape

    M32 = _round_up(M, _SAMPLES_PER_ROW)
    if M32 > M:                                   # tiny pad to fill the last row
        pt = jnp.pad(pt, ((0, M32 - M), (0, 0)))
        cv = jnp.pad(cv, ((0, M32 - M), (0, 0)))
    rows = M32 // _SAMPLES_PER_ROW
    pt = pt.reshape(rows, 128)                    # free reshapes: 32 samples/row
    cv = cv.reshape(rows, 128)

    # ---- tiling: big blocks, partial last block allowed, >=2 blocks (v7x) ----
    G = pl.cdiv(rows, _TR_MAX)
    if G == 1 and rows > 8:
        G = 2                                     # keep both v7x TCs busy
    TR = _round_up(pl.cdiv(rows, G), 8)
    n_blocks = pl.cdiv(rows, TR)

    in_specs = [pl.BlockSpec((TR, 128), lambda i: (i, 0)),
                pl.BlockSpec((TR, 128), lambda i: (i, 0))]
    cparams = pltpu.CompilerParams(
        dimension_semantics=("parallel",),
        vmem_limit_bytes=32 * 1024 * 1024)

    if reduction == "none":
        kernel = functools.partial(_mvn_nll_none_kernel, eps=eps)
        loss_q = pl.pallas_call(
            kernel,
            out_shape=jax.ShapeDtypeStruct((rows, 128), f32),
            grid_spec=pltpu.PrefetchScalarGridSpec(
                num_scalar_prefetch=0,
                grid=(n_blocks,),
                in_specs=in_specs,
                out_specs=pl.BlockSpec((TR, 128), lambda i: (i, 0)),
            ),
            compiler_params=cparams,
        )(pt, cv)
        # Exactly one lane per 4-lane quad is non-zero -> compact with a sum.
        loss = loss_q.reshape(M32, 4).sum(axis=-1)[:M]
        return loss.reshape(lead_shape)

    kernel = functools.partial(_mvn_nll_psum_kernel, eps=eps, tr=TR,
                               m_total=M, n_blocks=n_blocks)
    psums = pl.pallas_call(
        kernel,
        out_shape=jax.ShapeDtypeStruct((n_blocks, 8, 128), f32),
        grid_spec=pltpu.PrefetchScalarGridSpec(
            num_scalar_prefetch=0,
            grid=(n_blocks,),
            in_specs=in_specs,
            out_specs=pl.BlockSpec((1, 8, 128), lambda i: (i, 0, 0)),
        ),
        compiler_params=cparams,
    )(pt, cv)

    total = jnp.sum(psums)
    if reduction == "mean":
        return total / M
    return total


def _reference(pred, cov, target, reduction="mean", eps=1e-6):
    diff = (target - pred)[..., None, :]                       # (..., 1, 2)
    inv = jnp.linalg.inv(cov)
    quad = (diff @ inv @ jnp.swapaxes(diff, -2, -1))[..., 0, 0]
    loss = 0.5 * (jnp.log(jnp.linalg.det(cov) + eps) + quad)
    if reduction == "mean":
        return jnp.mean(loss)
    if reduction == "sum":
        return jnp.sum(loss)
    return loss


if __name__ == "__main__":
    key = jax.random.PRNGKey(0)
    k1, k2, k3 = jax.random.split(key, 3)
    B, L, D = 2, 4, 2                      # batch, landmarks, spatial_dims
    pred = jax.random.normal(k1, (B, L, D), dtype=jnp.float32)
    target = jax.random.normal(k2, (B, L, D), dtype=jnp.float32)
    A = jax.random.normal(k3, (B, L, D, D), dtype=jnp.float32)
    cov = A @ jnp.swapaxes(A, -2, -1) + 0.5 * jnp.eye(D, dtype=jnp.float32)

    out_mean = jax.block_until_ready(
        multivariate_gaussian_nll_loss(pred, cov, target, reduction="mean"))
    ref_mean = _reference(pred, cov, target, reduction="mean")
    assert jnp.allclose(out_mean, ref_mean, rtol=1e-5, atol=1e-5), (out_mean,
                                                                    ref_mean)

    out_sum = jax.block_until_ready(
        multivariate_gaussian_nll_loss(pred, cov, target, reduction="sum"))
    ref_sum = _reference(pred, cov, target, reduction="sum")
    assert jnp.allclose(out_sum, ref_sum, rtol=1e-5, atol=1e-5), (out_sum,
                                                                  ref_sum)

    out_none = jax.block_until_ready(
        multivariate_gaussian_nll_loss(pred, cov, target, reduction="none"))
    ref_none = _reference(pred, cov, target, reduction="none")
    assert jnp.allclose(out_none, ref_none, rtol=1e-5, atol=1e-5)

    print("KERNEL_OK")
</pallas_src>

<mosaic_0001>
module attributes {stable_mosaic.version = 11 : i64} {
  func.func @_mvn_nll_psum_kernel(%arg0: i32, %arg1: memref<8x128xf32, #tpu.memory_space<vmem>>, %arg2: memref<8x128xf32, #tpu.memory_space<vmem>>, %arg3: memref<1x8x128xf32, #tpu.memory_space<vmem>>) attributes {dimension_semantics = [#tpu.dimension_semantics<parallel>], iteration_bounds = array<i64: 1>, scalar_prefetch = 0 : i64, scratch_operands = 0 : i64, tpu.core_type = #tpu.core_type<tc>, window_params = [{transform_indices = @transform_0, window_bounds = array<i64: 8, 128>}, {transform_indices = @transform_1, window_bounds = array<i64: 8, 128>}, {transform_indices = @transform_2, window_bounds = array<i64: 1, 8, 128>}]} {
    %c0 = arith.constant 0 : index
    %c0_0 = arith.constant 0 : index
    %0 = vector.load %arg1[%c0, %c0_0] : memref<8x128xf32, #tpu.memory_space<vmem>>, vector<8x128xf32>
    %c0_1 = arith.constant 0 : index
    %c0_2 = arith.constant 0 : index
    %1 = vector.load %arg2[%c0_1, %c0_2] : memref<8x128xf32, #tpu.memory_space<vmem>>, vector<8x128xf32>
    %c1_i32 = arith.constant 1 : i32
    %2 = tpu.dynamic_rotate %1 by %c1_i32 dim 1 : vector<8x128xf32>, i32 -> vector<8x128xf32>
    %c2_i32 = arith.constant 2 : i32
    %3 = tpu.dynamic_rotate %1 by %c2_i32 dim 1 : vector<8x128xf32>, i32 -> vector<8x128xf32>
    %c3_i32 = arith.constant 3 : i32
    %4 = tpu.dynamic_rotate %1 by %c3_i32 dim 1 : vector<8x128xf32>, i32 -> vector<8x128xf32>
    %c2_i32_3 = arith.constant 2 : i32
    %5 = tpu.dynamic_rotate %0 by %c2_i32_3 dim 1 : vector<8x128xf32>, i32 -> vector<8x128xf32>
    %6 = arith.subf %0, %5 : vector<8x128xf32>
    %c1_i32_4 = arith.constant 1 : i32
    %7 = tpu.dynamic_rotate %6 by %c1_i32_4 dim 1 : vector<8x128xf32>, i32 -> vector<8x128xf32>
    %8 = arith.mulf %4, %1 : vector<8x128xf32>
    %9 = arith.mulf %3, %2 : vector<8x128xf32>
    %10 = arith.subf %8, %9 : vector<8x128xf32>
    %11 = tpu.reciprocal %10 {approx = true} : vector<8x128xf32> -> vector<8x128xf32>
    %12 = arith.mulf %10, %11 : vector<8x128xf32>
    %cst = arith.constant 2.000000e+00 : f32
    %13 = vector.broadcast %cst : f32 to vector<8x128xf32>
    %14 = arith.subf %13, %12 : vector<8x128xf32>
    %15 = arith.mulf %11, %14 : vector<8x128xf32>
    %16 = arith.mulf %1, %7 : vector<8x128xf32>
    %17 = arith.mulf %16, %7 : vector<8x128xf32>
    %18 = arith.addf %3, %2 : vector<8x128xf32>
    %19 = arith.mulf %18, %7 : vector<8x128xf32>
    %20 = arith.mulf %19, %6 : vector<8x128xf32>
    %21 = arith.subf %17, %20 : vector<8x128xf32>
    %22 = arith.mulf %4, %6 : vector<8x128xf32>
    %23 = arith.mulf %22, %6 : vector<8x128xf32>
    %24 = arith.addf %21, %23 : vector<8x128xf32>
    %25 = arith.mulf %24, %15 : vector<8x128xf32>
    %cst_5 = arith.constant 9.99999997E-7 : f32
    %26 = vector.broadcast %cst_5 : f32 to vector<8x128xf32>
    %27 = arith.addf %10, %26 : vector<8x128xf32>
    %28 = math.log %27 : vector<8x128xf32>
    %29 = arith.addf %28, %25 : vector<8x128xf32>
    %cst_6 = arith.constant 5.000000e-01 : f32
    %30 = vector.broadcast %cst_6 : f32 to vector<8x128xf32>
    %31 = arith.mulf %30, %29 : vector<8x128xf32>
    %32 = tpu.iota {dimensions = array<i32: 1>} : vector<8x128xi32>
    %c2_i32_7 = arith.constant 2 : i32
    %33 = vector.broadcast %c2_i32_7 : i32 to vector<8x128xi32>
    %34 = arith.shrsi %32, %33 : vector<8x128xi32>
    %c3_i32_8 = arith.constant 3 : i32
    %35 = tpu.dynamic_rotate %34 by %c3_i32_8 dim 1 : vector<8x128xi32>, i32 -> vector<8x128xi32>
    %36 = arith.cmpi eq, %35, %34 : vector<8x128xi32>
    %c0_i32 = arith.constant 0 : i32
    %37 = arith.cmpi slt, %arg0, %c0_i32 : i32
    %38 = arith.extui %37 : i1 to i32
    %c0_i32_9 = arith.constant 0 : i32
    %39 = arith.cmpi ne, %38, %c0_i32_9 : i32
    scf.if %39 {
      %cst_12 = arith.constant 0.000000e+00 : f32
      %43 = vector.broadcast %cst_12 : f32 to vector<8x128xf32>
      %44 = arith.select %36, %31, %43 : vector<8x128xi1>, vector<8x128xf32>
      %45 = vector.shape_cast %44 : vector<8x128xf32> to vector<1x8x128xf32>
      %c0_13 = arith.constant 0 : index
      %c0_14 = arith.constant 0 : index
      %c0_15 = arith.constant 0 : index
      %46 = vector.load %arg3[%c0_13, %c0_14, %c0_15] : memref<1x8x128xf32, #tpu.memory_space<vmem>>, vector<1x8x128xf32>
      tpu.vector_store %arg3[%c0_13, %c0_14, %c0_15], %45 {strides = array<i32>} : memref<1x8x128xf32, #tpu.memory_space<vmem>>, vector<1x8x128xf32>,
    } else {
    }
    %c0_i32_10 = arith.constant 0 : i32
    %40 = arith.cmpi sge, %arg0, %c0_i32_10 : i32
    %41 = arith.extui %40 : i1 to i32
    %c0_i32_11 = arith.constant 0 : i32
    %42 = arith.cmpi ne, %41, %c0_i32_11 : i32
    scf.if %42 {
      %43 = tpu.iota {dimensions = array<i32: 0>} : vector<8x128xi32>
      %c8_i32 = arith.constant 8 : i32
      %44 = arith.muli %arg0, %c8_i32 : i32
      %45 = vector.broadcast %44 : i32 to vector<8x128xi32>
      %46 = arith.addi %43, %45 : vector<8x128xi32>
      %c2_i32_12 = arith.constant 2 : i32
      %47 = vector.broadcast %c2_i32_12 : i32 to vector<8x128xi32>
      %48 = arith.shrsi %32, %47 : vector<8x128xi32>
      %c0_i32_13 = arith.constant 0 : i32
      %49 = vector.broadcast %c0_i32_13 : i32 to vector<8x128xi32>
      %50 = arith.cmpi slt, %46, %49 : vector<8x128xi32>
      %c0_i32_14 = arith.constant 0 : i32
      %51 = vector.broadcast %c0_i32_14 : i32 to vector<8x128xi32>
      %52 = arith.cmpi eq, %46, %51 : vector<8x128xi32>
      %c8_i32_15 = arith.constant 8 : i32
      %53 = vector.broadcast %c8_i32_15 : i32 to vector<8x128xi32>
      %54 = arith.cmpi slt, %48, %53 : vector<8x128xi32>
      %55 = arith.andi %52, %54 : vector<8x128xi1>
      %56 = arith.ori %50, %55 : vector<8x128xi1>
      %57 = arith.andi %36, %56 : vector<8x128xi1>
      %cst_16 = arith.constant 0.000000e+00 : f32
      %58 = vector.broadcast %cst_16 : f32 to vector<8x128xf32>
      %59 = arith.select %57, %31, %58 : vector<8x128xi1>, vector<8x128xf32>
      %60 = vector.shape_cast %59 : vector<8x128xf32> to vector<1x8x128xf32>
      %c0_17 = arith.constant 0 : index
      %c0_18 = arith.constant 0 : index
      %c0_19 = arith.constant 0 : index
      %61 = vector.load %arg3[%c0_17, %c0_18, %c0_19] : memref<1x8x128xf32, #tpu.memory_space<vmem>>, vector<1x8x128xf32>
      tpu.vector_store %arg3[%c0_17, %c0_18, %c0_19], %60 {strides = array<i32>} : memref<1x8x128xf32, #tpu.memory_space<vmem>>, vector<1x8x128xf32>,
    } else {
    }
    return
  }
  func.func @transform_0(%arg0: i32) -> (i32, i32) {
    %c0_i32 = arith.constant 0 : i32
    %c0_i32_0 = arith.constant 0 : i32
    return %arg0, %c0_i32 : i32, i32
  }
  func.func @transform_1(%arg0: i32) -> (i32, i32) {
    %c0_i32 = arith.constant 0 : i32
    %c0_i32_0 = arith.constant 0 : i32
    return %arg0, %c0_i32 : i32, i32
  }
  func.func @transform_2(%arg0: i32) -> (i32, i32, i32) {
    %c0_i32 = arith.constant 0 : i32
    %c0_i32_0 = arith.constant 0 : i32
    %c0_i32_1 = arith.constant 0 : i32
    return %arg0, %c0_i32, %c0_i32_0 : i32, i32, i32
  }
}

</mosaic_0001>

<bundles_post_ra>
// kernel: tpu_custom_call.1
= control target key start
LH: loop header
LB: loop body
LE: loop exit
PB: predicated region body
PF: predicated region fallthrough
CT: control target
= control target key end

     0   :  { %7 = vsyncpa [#allocation3], 0  ;;  %s211_s0 = inlined_call_operand.hbm [shape: f32[1,128], index: 0, kind: input, shape index: {}]   ;;  %s212_s1 = inlined_call_operand.vmem [shape: f32[1,128], index: 1, kind: input, shape index: {}]   ;;  %s213_s2 = inlined_call_operand.hbm [shape: f32[1,8,128], index: 2, kind: output, shape index: {}]  }
   0x1   :  { %8 = vsyncpa [#allocation4], 0 }
   0x2   :  { %13 = vsyncadd [#allocation3], 112  ;;  %s163_s9 = smov [#allocation2]   ;;  %s115_s13 = scalar_lea.hbm %s211_s0, 16 }
   0x3   :  { %s14_s10 = sshll.u32 %s163_s9, 4  ;;  %p116_p0 = scmp.ne.s32.totalorder %s211_s0, %s115_s13  ;;  %s15_s10 = int_to_ptr.vmem [resolvable:$true] %s14_s10 }
   0x4   :  { %p119_p1 = scmp.lt.u32.totalorder %s115_s13, %s211_s0 }
   0x6   :  { %p121_p2 = pnand %p119_p1, %p116_p0 }
   0x8   :  { %124 = shalt.err (!%p121_p2)
}
   0x9   :  { %s125_s18 = scalar_lea.vmem %s15_s10, 16  ;;  %s129_s19 = scalar_lea.vmem %s15_s10, 128 }
   0xa   :  { %p126_p3 = scmp.ne.s32.totalorder %s15_s10, %s125_s18  ;;  %p130_p4 = scmp.lt.s32.totalorder %s15_s10, %s15_s10 }
   0xb   :  { %p131_p5 = scmp.lt.s32.totalorder %s129_s19, %s125_s18 }
   0xd   :  { %p132_p6 = por %p131_p5, %p130_p4 }
   0xf   :  { %p133_p7 = pnand %p132_p6, %p126_p3 }
  0x11   :  { %136 = shalt.err (!%p133_p7)
}
  0x12   :  { %s164_s20 = smov 16   ;;  %s165_s21 = smov 1  }
  0x13   :  { %20 = dma.hbm_to_vmem [thread:$0]  %s211_s0, 16, %s15_s10, [#allocation3], %s164_s20, %s164_s20, %s165_s21  }
  0x14   :  { %159 = dma.done.wait [#allocation3], 128  }
  0x15   :  { %160 = vsyncadd [#allocation3], 4294967168  ;;  %v61_v0 = vlaneseq  ;;  %v27_v1 = vld [vmem:[%s212_s1] sm:$0xff]  ;;  %s166_s26 = smov 2   ;;  %s167_s27 = smov 3  }
  0x16   :  { %v26_v2 = vld [vmem:[#allocation2] sm:$0xff]  ;;  %30 = vrot.lane.b32.xlu1 %v27_v1, %s166_s26  ;;  %s168_s0 = smov [#allocation5]  }
  0x17   :  { %34 = vrot.lane.b32.xlu0 %v26_v2, %s166_s26  ;;  %v62_v3 = vand.u32 127, %v61_v0  ;;  %v78_v21 = vshrl.u32 %v61_v0, 7  ;;  %s96_s1 = sshll.u32 %s168_s0, 4  ;;  %s97_s1 = int_to_ptr.vmem [resolvable:$true] %s96_s1 }
  0x18   :  { %s137_s28 = scalar_lea.vmem %s97_s1, 128  ;;  %p142_p9 = scmp.lt.s32.totalorder %s97_s1, %s97_s1 }
  0x19   :  { %v63_v4 = vshra.s32 %v62_v3, 2  ;;  %vm83_vm0 = vcmp.eq.s32.totalorder %v78_v21, 0  ;;  %p138_p8 = scmp.ne.s32.totalorder %s97_s1, %s137_s28  ;;  %p143_p10 = scmp.lt.s32.totalorder %s137_s28, %s137_s28 }
  0x1a   :  { %32 = vrot.lane.b32.xlu1 %v27_v1, %s167_s27 }
  0x1b   :  { %28 = vrot.lane.b32.xlu0 %v27_v1, %s165_s21  ;;  %vm84_vm1 = vcmp.lt.s32.totalorder %v63_v4, 8  ;;  %p144_p11 = por %p143_p10, %p142_p9 }
  0x1c   :  { %vm85_vm2 = vmand %vm83_vm0, %vm84_vm1 }
  0x1d   :  { %p145_p12 = pnand %p144_p11, %p138_p8 }
  0x1e   :  { %64 = vrot.lane.b32.xlu1 %v63_v4, %s167_s27 }
  0x88   :  { %v31_v7 = vpop.permute.xlu1 %30 }
  0x89   :  { %v35_v5 = vpop.permute.xlu0 %34 }
  0x8a   :  { %v36_v6 = vsub.f32 %v26_v2, %v35_v5 }
  0x8c   :  { %37 = vrot.lane.b32.xlu0 %v36_v6, %s165_s21  ;;  %v33_v9 = vpop.permute.xlu1 %32 }
  0x8d   :  { %v29_v8 = vpop.permute.xlu0 %28  ;;  %v39_v10 = vmul.f32 %v33_v9, %v27_v1  ;;  %v52_v18 = vmul.f32 %v36_v6, %v33_v9 }
  0x8e   :  { %v40_v11 = vmul.f32 %v31_v7, %v29_v8  ;;  %v48_v16 = vadd.f32 %v31_v7, %v29_v8 }
  0x8f   :  { %v53_v25 = vmul.f32 %v52_v18, %v36_v6 }
  0x90   :  { %v41_v12 = vsub.f32 %v39_v10, %v40_v11  ;;  %v65_v28 = vpop.permute.xlu1 %64 }
  0x91   :  { %vm66_vm3 = vcmp.eq.s32.totalorder %v65_v28, %v63_v4 }
  0x92   :  { %111 = vrcp.f32 %v41_v12  ;;  %v56_v13 = vadd.f32 1e-06, %v41_v12  ;;  %vm87_vm4 = vmand %vm66_vm3, %vm85_vm2 }
  0x94   :  { %113 = vlog2.f32 %v56_v13 }
  0x9c   :  { %v112_v14 = vpop.eup %111 }
  0x9d   :  { %v43_v15 = vmul.f32 %v112_v14, %v41_v12 }
  0x9e   :  { %v114_v27 = vpop.eup %113 }
  0x9f   :  { %v44_v22 = vsub.f32 2.0, %v43_v15  ;;  %v58_v32 = vmul.f32 0.6931472, %v114_v27 }
  0xa1   :  { %v45_v30 = vmul.f32 %v112_v14, %v44_v22 }
  0xfe   :  { %v38_v17 = vpop.permute.xlu0 %37 }
  0xff   :  { %v46_v19 = vmul.f32 %v38_v17, %v27_v1  ;;  %v49_v20 = vmul.f32 %v48_v16, %v38_v17 }
 0x101   :  { %v47_v23 = vmul.f32 %v46_v19, %v38_v17  ;;  %v50_v24 = vmul.f32 %v49_v20, %v36_v6 }
 0x103   :  { %v51_v26 = vsub.f32 %v47_v23, %v50_v24 }
 0x105   :  { %v54_v29 = vadd.f32 %v53_v25, %v51_v26 }
 0x107   :  { %v55_v31 = vmul.f32 %v54_v29, %v45_v30 }
 0x109   :  { %v59_v33 = vadd.f32 %v58_v32, %v55_v31 }
 0x10b   :  { %v60_v34 = vmul.f32 0.5, %v59_v33 }
 0x10d   :  { %v88_v35 = vsel %vm87_vm4, %v60_v34, 0.0 }
 0x10e   :  { %89 = vst [vmem:[#allocation5] sm:$0xff] %v88_v35 }
 0x10f   :  { %148 = shalt.err (!%p145_p12)
}
 0x110   :  { %s149_s3 = scalar_lea.hbm %s213_s2, 128 }
 0x111   :  { %p150_p13 = scmp.ne.s32.totalorder %s213_s2, %s149_s3  ;;  %p153_p0 = scmp.lt.u32.totalorder %s149_s3, %s213_s2 }
 0x113   :  { %p155_p1 = pnand %p153_p0, %p150_p13 }
 0x115   :  { %158 = shalt.err (!%p155_p1)
}
 0x116   :  { %99 = dma.vmem_to_hbm [thread:$0]  %s97_s1, 128, %s213_s2, [#allocation4]  }
 0x117   :  { %161 = dma.done.wait [#allocation4], 128  }
 0x118   :  { %162 = vsyncadd [#allocation4], 4294967168 }
 0x119   :  { %103 = vsyncpa [#allocation3], 1 }
 0x11a   :  { %104 = vsyncpa [#allocation4], 1 }

</bundles_post_ra>
